<compile_context>
chip_gen: v7x
topology: tpu7x:2x2x1
jax: 0.10.0
libtpu: 0.0.40
codegen_flags: <defaults>
</compile_context>

<pallas_src>
import functools

import jax
import jax.numpy as jnp
from jax.experimental import pallas as pl
from jax.experimental.pallas import tpu as pltpu


def _apply_nonlinearity(x, kind):
    if kind == "identity":
        return x
    if kind == "exp":
        return jnp.exp(x)
    if kind == "relu":
        # matches the torch module: torch.relu(x) + 1e-10
        return jnp.maximum(x, 0.0) + 1e-10
    if kind == "softplus":
        return jax.nn.softplus(x)
    raise ValueError(f"unknown nonlinearity: {kind}")


def _observation_kernel(z_ref, Bt_ref, bias_ref, o_ref, *, nonlinearity):
    # z_ref:    (1, dz, tc)  VMEM tile of z in native layout (columns = T*K slice)
    # Bt_ref:   (dx, dz)     readout matrix transposed (resident, tiny)
    # bias_ref: (dx, 1)      bias column, broadcast over the tc lanes
    # o_ref:    (1, dx, tc)  output tile, lane-dense along tc
    z_tile = z_ref[0]                                    # (dz, tc)
    acc = jnp.dot(Bt_ref[...], z_tile,
                  preferred_element_type=jnp.float32)    # (dx, tc) f32
    acc = acc + bias_ref[...]                            # broadcast (dx, 1)
    o_ref[0] = _apply_nonlinearity(acc, nonlinearity).astype(o_ref.dtype)


def observation_forward(z, B, Bias, *, out_nonlinearity="identity",
                        identity_readout=False, mask=None, max_tc=4096):
    """
    Args:
        z:    (n_trials, dz, T, K) latent time series
        B:    (dz, dx) readout matrix
        Bias: (1, dx, 1, 1) bias (same shape convention as the torch module)
    Returns:
        X:    (n_trials, dx, T, K) observations
    """
    n_trials, dz, T, K = z.shape
    dx = B.shape[1]

    # cast_B: identity_readout multiplies B by its diagonal mask
    if identity_readout:
        if mask is None:
            # same mask the torch module builds in __init__ (ones on the diag)
            mask = jnp.zeros((dz, dx), B.dtype).at[
                jnp.arange(dx), jnp.arange(dx)].set(1.0)
        B_eff = B * mask
    else:
        B_eff = B

    TK = T * K
    # Free reshape: merges contiguous trailing dims, no data movement.
    zf = z.reshape(n_trials, dz, TK)

    # Column-tile width along T*K. Use the full extent if it fits, otherwise a
    # large multiple of 128 so stores are unmasked lane-dense vst and per-step
    # pipeline overhead is amortized. (Partial last block handled by Pallas.)
    max_tc = max(128, (max_tc // 128) * 128)
    tc = TK if TK <= max_tc else max_tc
    num_col_blocks = pl.cdiv(TK, tc)

    Bt = jnp.asarray(B_eff, z.dtype).T                   # (dx, dz)
    bias_col = Bias.reshape(dx, 1).astype(jnp.float32)   # (dx, 1)

    kernel = functools.partial(_observation_kernel, nonlinearity=out_nonlinearity)

    itemsize = jnp.dtype(z.dtype).itemsize
    n_out_elems = n_trials * dx * TK
    cost = pl.CostEstimate(
        flops=2 * n_trials * TK * dz * dx,
        transcendentals=(n_out_elems if out_nonlinearity in ("exp", "softplus")
                         else 0),
        bytes_accessed=(zf.size * itemsize + n_out_elems * itemsize
                        + Bt.size * jnp.dtype(Bt.dtype).itemsize + dx * 4),
    )

    out = pl.pallas_call(
        kernel,
        out_shape=jax.ShapeDtypeStruct((n_trials, dx, TK), z.dtype),
        grid_spec=pltpu.PrefetchScalarGridSpec(
            num_scalar_prefetch=0,
            grid=(n_trials, num_col_blocks),
            in_specs=[
                pl.BlockSpec((1, dz, tc), lambda b, c: (b, 0, c)),  # z tile
                pl.BlockSpec((dx, dz), lambda b, c: (0, 0)),        # B^T (resident)
                pl.BlockSpec((dx, 1), lambda b, c: (0, 0)),         # bias (resident)
            ],
            out_specs=pl.BlockSpec((1, dx, tc), lambda b, c: (b, 0, c)),
        ),
        compiler_params=pltpu.CompilerParams(
            dimension_semantics=("parallel", "parallel")),
        cost_estimate=cost,
    )(zf, Bt, bias_col)

    # Free reshape: splits contiguous trailing dim back into (T, K).
    return out.reshape(n_trials, dx, T, K)


def reference_forward(z, B, Bias, out_nonlinearity="identity"):
    y = jnp.einsum("zx,bzTK->bxTK", B, z) + Bias
    return _apply_nonlinearity(y, out_nonlinearity)


if __name__ == "__main__":
    # Small shapes consistent with the module's forward:
    #   z: n_trials x dz x T x K
    n_trials, dz, dx, T, K = 2, 32, 16, 16, 4

    key = jax.random.PRNGKey(0)
    kz, kB = jax.random.split(key)

    # Deterministic parameter init matching the module's __init__
    # (non-identity readout branch).
    B = jnp.sqrt(2.0 / dz) * jax.random.normal(kB, (dz, dx), dtype=jnp.float32)
    Bias = jnp.zeros((1, dx, 1, 1), dtype=jnp.float32)

    z = jax.random.normal(kz, (n_trials, dz, T, K), dtype=jnp.float32)

    # identity nonlinearity
    X = observation_forward(z, B, Bias, out_nonlinearity="identity")
    X = jax.block_until_ready(X)
    X_ref = reference_forward(z, B, Bias, out_nonlinearity="identity")
    assert X.shape == (n_trials, dx, T, K), X.shape
    assert jnp.allclose(X, X_ref, atol=1e-5, rtol=1e-5), float(
        jnp.max(jnp.abs(X - X_ref)))

    # softplus nonlinearity (exercises the EUP path in-kernel)
    Xs = observation_forward(z, B, Bias, out_nonlinearity="softplus")
    Xs = jax.block_until_ready(Xs)
    Xs_ref = reference_forward(z, B, Bias, out_nonlinearity="softplus")
    assert jnp.allclose(Xs, Xs_ref, atol=1e-5, rtol=1e-5), float(
        jnp.max(jnp.abs(Xs - Xs_ref)))

    # identity_readout branch (diagonal-masked B)
    Xi = observation_forward(z, B, Bias, out_nonlinearity="relu",
                             identity_readout=True)
    Xi = jax.block_until_ready(Xi)
    mask = jnp.zeros((dz, dx)).at[jnp.arange(dx), jnp.arange(dx)].set(1.0)
    Xi_ref = reference_forward(z, B * mask, Bias, out_nonlinearity="relu")
    assert jnp.allclose(Xi, Xi_ref, atol=1e-5, rtol=1e-5), float(
        jnp.max(jnp.abs(Xi - Xi_ref)))

    print("KERNEL_OK")
</pallas_src>

<mosaic_0001>
module attributes {stable_mosaic.version = 11 : i64} {
  func.func @_observation_kernel(%arg0: i32, %arg1: i32, %arg2: memref<1x32x64xf32, #tpu.memory_space<vmem>>, %arg3: memref<16x32xf32, #tpu.memory_space<vmem>>, %arg4: memref<16x1xf32, #tpu.memory_space<vmem>>, %arg5: memref<1x16x64xf32, #tpu.memory_space<vmem>>) attributes {dimension_semantics = [#tpu.dimension_semantics<parallel>, #tpu.dimension_semantics<parallel>], iteration_bounds = array<i64: 2, 1>, scalar_prefetch = 0 : i64, scratch_operands = 0 : i64, tpu.core_type = #tpu.core_type<tc>, window_params = [{transform_indices = @transform_0, window_bounds = array<i64: 1, 32, 64>}, {pipeline_mode = #tpu.pipeline_mode<synchronous>, transform_indices = @transform_1, window_bounds = array<i64: 16, 32>}, {pipeline_mode = #tpu.pipeline_mode<synchronous>, transform_indices = @transform_2, window_bounds = array<i64: 16, 1>}, {transform_indices = @transform_3, window_bounds = array<i64: 1, 16, 64>}]} {
    %c0 = arith.constant 0 : index
    %c0_0 = arith.constant 0 : index
    %c0_1 = arith.constant 0 : index
    %0 = vector.load %arg2[%c0, %c0_0, %c0_1] : memref<1x32x64xf32, #tpu.memory_space<vmem>>, vector<1x32x64xf32>
    %1 = vector.shape_cast %0 : vector<1x32x64xf32> to vector<32x64xf32>
    %c0_2 = arith.constant 0 : index
    %c0_3 = arith.constant 0 : index
    %2 = vector.load %arg3[%c0_2, %c0_3] : memref<16x32xf32, #tpu.memory_space<vmem>>, vector<16x32xf32>
    %cst = arith.constant dense<0.000000e+00> : vector<16x64xf32>
    %3 = tpu.matmul %2, %1, %cst {dimension_numbers = #tpu.dot_dimension_numbers<[1], [0], [0], [1], [0, 0, 1, 1], [], []>} : vector<16x32xf32>, vector<32x64xf32>, vector<16x64xf32> -> vector<16x64xf32>
    %c0_4 = arith.constant 0 : index
    %c0_5 = arith.constant 0 : index
    %4 = vector.load %arg4[%c0_4, %c0_5] : memref<16x1xf32, #tpu.memory_space<vmem>>, vector<16x1xf32>
    %5 = vector.broadcast %4 : vector<16x1xf32> to vector<16x64xf32>
    %6 = arith.addf %3, %5 : vector<16x64xf32>
    %c0_6 = arith.constant 0 : index
    %c0_7 = arith.constant 0 : index
    %c0_8 = arith.constant 0 : index
    %7 = vector.load %arg5[%c0_6, %c0_7, %c0_8] : memref<1x16x64xf32, #tpu.memory_space<vmem>>, vector<1x16x64xf32>
    %8 = vector.shape_cast %7 : vector<1x16x64xf32> to vector<16x64xf32>
    %9 = vector.shape_cast %6 : vector<16x64xf32> to vector<1x16x64xf32>
    tpu.vector_store %arg5[%c0_6, %c0_7, %c0_8], %9 {strides = array<i32>} : memref<1x16x64xf32, #tpu.memory_space<vmem>>, vector<1x16x64xf32>,
    return
  }
  func.func @transform_0(%arg0: i32, %arg1: i32) -> (i32, i32, i32) {
    %c0_i32 = arith.constant 0 : i32
    %c0_i32_0 = arith.constant 0 : i32
    return %arg0, %c0_i32, %arg1 : i32, i32, i32
  }
  func.func @transform_1(%arg0: i32, %arg1: i32) -> (i32, i32) {
    %c0_i32 = arith.constant 0 : i32
    %c0_i32_0 = arith.constant 0 : i32
    %c0_i32_1 = arith.constant 0 : i32
    return %c0_i32, %c0_i32_0 : i32, i32
  }
  func.func @transform_2(%arg0: i32, %arg1: i32) -> (i32, i32) {
    %c0_i32 = arith.constant 0 : i32
    %c0_i32_0 = arith.constant 0 : i32
    %c0_i32_1 = arith.constant 0 : i32
    return %c0_i32, %c0_i32_0 : i32, i32
  }
  func.func @transform_3(%arg0: i32, %arg1: i32) -> (i32, i32, i32) {
    %c0_i32 = arith.constant 0 : i32
    %c0_i32_0 = arith.constant 0 : i32
    return %arg0, %c0_i32, %arg1 : i32, i32, i32
  }
}

</mosaic_0001>

<bundles_post_ra>
// kernel: tpu_custom_call.1
= control target key start
LH: loop header
LB: loop body
LE: loop exit
PB: predicated region body
PF: predicated region fallthrough
CT: control target
= control target key end

     0   :  { %8 = vsyncpa [#allocation3], 0  ;;  %s852_s0 = inlined_call_operand.hbm [shape: f32[2,32,64], index: 0, kind: input, shape index: {}]   ;;  %s853_s1 = inlined_call_operand.vmem [shape: f32[16,32], index: 1, kind: input, shape index: {}]   ;;  %s854_s2 = inlined_call_operand.vmem [shape: f32[16,1], index: 2, kind: input, shape index: {}]   ;;  %s855_s3 = inlined_call_operand.hbm [shape: f32[2,16,64], index: 3, kind: output, shape index: {}]  }
   0x1   :  { %10 = vsyncpa [#allocation3 + $0x1], 0 }
   0x2   :  { %11 = vsyncpa [#allocation4], 0 }
   0x3   :  { %13 = vsyncpa [#allocation4 + $0x1], 0  ;;  %s662_s12 = smov 0   ;;  %s664_s13 = smov 0  }
   0x4   :  { %s666_s14 = smov 0   ;;  %s668_s15 = smov 0  }
   0x5   :  { %s670_s16 = smov 0   ;;  %s672_s17 = smov 0  }
   0x6 LB: > { %s409_s18 = sadd.s32 4294967295, %s633_s17   ;;  %s410_s19 = sadd.s32 4294967294, %s633_s17   ;;  %s633_s17 = sphi %s672_s17, %s19_s17   ;;  %s629_s16 = sphi %s670_s16, %s870_s16   ;;  %s625_s15 = sphi %s668_s15, %s869_s15   ;;  %s621_s14 = sphi %s666_s14, %s868_s14   ;;  %s617_s13 = sphi %s664_s13, %s867_s13   ;;  %s613_s12 = sphi %s662_s12, %s866_s12  }
   0x7   : > { %s31_s20 = sadd.s32 1, %s629_s16  ;;  %s40_s21 = sadd.s32 1, %s621_s14 }
   0x8   : > { %p33_p0 = scmp.ge.s32.totalorder %s31_s20, 2  ;;  %p47_p1 = scmp.ne.s32.totalorder %s621_s14, %s617_s13 }
   0x9   : > { %p48_p2 = scmp.eq.s32.totalorder %s633_s17, 0  ;;  %p53_p3 = scmp.ne.s32.totalorder %s617_s13, %s613_s12 }
   0xa   : > { %s872_s20 = smov (%p33_p0, %s31_s20), 0  ;;  %p54_p5 = scmp.eq.s32.totalorder %s409_s18, 0 }
   0xb   : > { %p703_p4 = por %p48_p2, %p47_p1  ;;  %s35_s23 = ssub.s32 %s629_s16, %s872_s20 }
   0xc   : > { %p121_p6 = scmp.eq.s32.totalorder %s409_s18, 1  ;;  %p38_p7 = scmp.eq.s32.totalorder %s35_s23, 0 }
   0xd   : > { %p709_p8 = por %p54_p5, %p53_p3  ;;  %p127_p10 = scmp.eq.s32.totalorder %s410_s19, 1 }
   0xe   : > { %p713_p9 = por %p121_p6, %p47_p1  ;;  %p465_p13 = scmp.lt.s32.totalorder %s633_s17, 2 }
   0xf   : > { %s718_s26 = scalar_select %p38_p7, %s621_s14, %s40_s21  }
  0x10   : > { %s859_s25 = scalar_select %p713_p9, 1, 0 }
  0x11   : > { %p720_p11 = por %p127_p10, %p53_p3  ;;  %s153_s28 = sand.u32 1, %s621_s14  }
  0x12   : > { %s413_s29 = sshll.u32 %s153_s28, 5  ;;  %s426_s30 = sshll.u32 %s629_s16, 9 }
  0x13   : > { %s860_s27 = scalar_select %p720_p11, 1, 0 }
  0x14   : > { %s731_s6 = scalar_lea.hbm %s852_s0, %s426_s30  ;;  %s157_s7 = scalar_lea.vmem [#allocation2], %s413_s29 }
  0x15   : > { %s165_s8 = sshll.u32 %s157_s7, 4  ;;  %p737_p0 = pnand %p465_p13, %p703_p4  ;;  %s733_s8 = int_to_ptr.vmem [resolvable:$true] %s165_s8 }
  0x16   : > { %s742_s10 = scalar_lea.sflag [#allocation3], %s153_s28  ;;  %s521_s11 = scalar_lea.hbm %s731_s6, 512 }
  0x17   : > { %p522_p2 = scmp.ne.s32.totalorder %s731_s6, %s521_s11  ;;  %p523_p3 = pneg %p737_p0 }
  0x18   : > { %s526_s21 = scalar_lea.hbm %s852_s0, 1024  ;;  %p527_p4 = scmp.lt.u32.totalorder %s731_s6, %s852_s0 }
  0x19   : > { %p524_p5 = pnand %p523_p3, %p522_p2  ;;  %p528_p7 = scmp.lt.u32.totalorder %s526_s21, %s521_s11 }
  0x1a   : > { %p530_p13 = scmp.lt.u32.totalorder %s521_s11, %s731_s6 }
  0x1b   : > { %p525_p6 = pneg %p524_p5  ;;  %p529_p10 = por %p528_p7, %p527_p4 }
  0x1d   : > { %p531_p12 = por %p530_p13, %p529_p10 }
  0x1f   : > { %p532_p1 = pnand %p531_p12, %p525_p6 }
  0x21   : > { %535 = shalt.err (!%p532_p1)
}
  0x22   : > { %s536_s28 = scalar_lea.vmem %s733_s8, 512  ;;  %s635_s29 = smov [#allocation2]  }
  0x23   : > { %p537_p2 = scmp.ne.s32.totalorder %s733_s8, %s536_s28  ;;  %s541_s30 = sshll.u32 %s635_s29, 4  ;;  %s542_s30 = int_to_ptr.vmem [resolvable:$false] %s541_s30 }
  0x24   : > { %s543_s4 = scalar_lea.vmem %s542_s30, 1024  ;;  %p544_p9 = scmp.lt.s32.totalorder %s733_s8, %s542_s30 }
  0x25   : > { %p539_p5 = pnand %p537_p2, %p523_p3  ;;  %p545_p4 = scmp.lt.s32.totalorder %s543_s4, %s536_s28 }
  0x27   : > { %p540_p11 = pneg %p539_p5  ;;  %p546_p7 = por %p545_p4, %p544_p9 }
  0x29   : > { %p547_p10 = pnand %p546_p7, %p540_p11 }
  0x2b   : > { %550 = shalt.err (!%p547_p10)
}
  0x2c   : > { %s636_s5 = smov 128   ;;  %s637_s7 = smov 8  }
  0x2d   : > { %460 = dma.hbm_to_vmem [thread:$0]  (!%p737_p0), %s731_s6, 512, %s733_s8, %s742_s10, %s636_s5, %s636_s5, %s637_s7  }
  0x2e   : > { %p173_p12 = scmp.lt.s32.totalorder %s633_s17, 3  ;;  %p862_p1 = scmp.ge.s32.totalorder %s633_s17, 1 }
  0x30   : > { %p174_p3 = pnand %p862_p1, %p173_p12 }
  0x31   : > { %s774_s11 = sand.u32 (!%p174_p3), 1, %s617_s13  }
  0x32   : > { %177 = sbr.rel (%p174_p3) target bundleno = 299 (0x12b), region = 32  ;;  %s417_s18 = sshll.u32 (!%p174_p3), %s774_s11, 5 }
  0x33   : > { %s180_s19 = scalar_lea.sflag (!%p174_p3), [#allocation3], %s774_s11  ;;  %s183_s21 = scalar_lea.vmem (!%p174_p3), [#allocation2], %s417_s18 }
  0x39   : > { %604 = dma.done.wait (%p709_p8), %s180_s19, 512  }
  0x3a   : > { %606 = vsyncadd (%p709_p8), %s180_s19, 4294966784  ;;  %v638_v0 = vmov 0   ;;  %vm224_vm0 = vcmask 261120   ;;  %v206_v1 = vld [vmem:[%s183_s21] sm:$0xff]  ;;  %v207_v2 = vld [vmem:[%s183_s21 + $0x8] sm:$0xff]  ;;  %s418_s29 = sshll.u32 %s774_s11, 4 }
  0x3b   : > { %520 = vset.pattern.permute.xlu0 %v638_v0  ;;  %v208_v3 = vld [vmem:[%s183_s21 + $0x10] sm:$0xff]  ;;  %v445_v4 = vpack.c.bf16 %v207_v2, %v206_v1  ;;  %v209_v5 = vld [vmem:[%s183_s21 + $0x18] sm:$0xff]  ;;  %v210_v6 = vld [vmem:[%s853_s1] sm:$0xff]  ;;  %s205_s30 = scalar_lea.vmem [#allocation5], %s418_s29  ;;  %s427_s5 = sshll.u32 %s625_s15, 8  ;;  %vm306_vm1 = vcmask 523264  }
  0x3c   : > { %v449_v7 = vpack.c.bf16 %v209_v5, %v208_v3  ;;  %442 = vmatprep.mubr.msk.f32.mxu0 %vm224_vm0, %v210_v6  ;;  %v212_v8 = vld [vmem:[%s854_s2] sm:$0xff]  ;;  %v213_v9 = vld [vmem:[%s854_s2 + $0x8] sm:$0xff]  ;;  %s324_s4 = sshll.u32 %s205_s30, 4  ;;  %s803_s19 = scalar_lea.hbm %s855_s3, %s427_s5  ;;  %s798_s4 = int_to_ptr.vmem [resolvable:$true] %s324_s4 }
  0x3d   : > { %446 = vmatprep.subr.bf16.mxu0 %v445_v4  ;;  %216 = vperm.xlu0 %520, %v212_v8   ;;  %v211_v10 = vld [vmem:[%s853_s1 + $0x8] sm:$0xff]  ;;  %s310_s21 = scalar_lea.sflag [#allocation4], %s774_s11  ;;  %s551_s15 = scalar_lea.vmem %s798_s4, 256 }
  0x3e   : > { %448 = vmatpush3.bf16.msra.mxu0 %v445_v4  ;;  %p552_p8 = scmp.ne.s32.totalorder %s798_s4, %s551_s15  ;;  %p863_p9 = scmp.ne.s32.totalorder %s859_s25, 0 }
  0x3f   : > { %450 = vmatprep.subr.bf16.mxu0 %v449_v7  ;;  %s639_s6 = smov [#allocation5]  }
  0x40   : > { %p553_p11 = pnand %p552_p8, %p863_p9  ;;  %s555_s8 = sshll.u32 %s639_s6, 4  ;;  %s556_s8 = int_to_ptr.vmem [resolvable:$false] %s555_s8 }
  0x41   : > { %221 = vperm.xlu0 %520, %v213_v9   ;;  %s557_s9 = scalar_lea.vmem %s556_s8, 512  ;;  %p558_p6 = scmp.lt.s32.totalorder %s798_s4, %s556_s8 }
  0x42   : > { %452 = vmatpush3.bf16.msra.mxu0 %v449_v7  ;;  %p554_p0 = pneg %p553_p11  ;;  %p559_p13 = scmp.lt.s32.totalorder %s557_s9, %s551_s15 }
  0x44   : > { %p560_p2 = por %p559_p13, %p558_p6 }
  0x45   : > { %443 = vmatmul.mubr.msk.f32.vlgmr.msra.gmra.mrb[0].mxu0 %vm224_vm0, %v211_v10 }
  0x46   : > { %p561_p5 = pnand %p560_p2, %p554_p0 }
  0xbc   : > { %v217_v11 = vpop.permute.xlu0 %216 }
  0xc0   : > { %v222_v12 = vpop.permute.xlu0 %221 }
 0x118   : > { %v444_v13 = vpop.f32.mrb[0].mxu0 }
 0x119   : > { %v303_v14 = vadd.f32 %v444_v13, %v222_v12  ;;  %v297_v15 = vpop.f32.mrb[1].mxu0 }
 0x11a   : > { %v298_v16 = vadd.f32 %v297_v15, %v217_v11 }
 0x11b   : > { %308 = vst.msk [vmem:[%s205_s30 + $0x8] sm:$0xff] %vm306_vm1, %v303_v14 }
 0x11c   : > { %307 = vst.msk [vmem:[%s205_s30] sm:$0xff] %vm306_vm1, %v298_v16 }
 0x11d   : > { %564 = shalt.err (!%p561_p5)
}
 0x11e   : > { %s565_s24 = scalar_lea.hbm %s803_s19, 256  ;;  %s569_s23 = scalar_lea.hbm %s855_s3, 512 }
 0x11f   : > { %p566_p4 = scmp.ne.s32.totalorder %s803_s19, %s565_s24  ;;  %p570_p12 = scmp.lt.u32.totalorder %s803_s19, %s855_s3 }
 0x120   : > { %p571_p1 = scmp.lt.u32.totalorder %s569_s23, %s565_s24  ;;  %p573_p8 = scmp.lt.u32.totalorder %s565_s24, %s803_s19 }
 0x121   : > { %p567_p7 = pnand %p566_p4, %p863_p9 }
 0x122   : > { %p572_p3 = por %p571_p1, %p570_p12 }
 0x123   : > { %p568_p10 = pneg %p567_p7 }
 0x124   : > { %p574_p11 = por %p573_p8, %p572_p3 }
 0x126   : > { %p575_p0 = pnand %p574_p11, %p568_p10 }
 0x128   : > { %578 = shalt.err (!%p575_p0)
}
 0x129   : > { %s640_s30 = smov 128   ;;  %s641_s5 = smov 8  }
 0x12a   : > { %455 = dma.vmem_to_hbm [thread:$0]  (%p863_p9), %s798_s4, 256, %s803_s19, %s310_s21, %s640_s30, %s640_s30, %s641_s5  }
 0x12b PF: > { %s339_s7 = sand.u32 1, %s613_s12   ;;  %p864_p6 = scmp.ne.s32.totalorder %s860_s27, 0 }
 0x12c   : > { %p865_p13 = scmp.ge.s32.totalorder %s633_s17, 2  ;;  %s340_s18 = scalar_lea.sflag [#allocation4], %s339_s7 }
 0x12e   : > { %p462_p2 = pnand %p865_p13, %p864_p6 }
 0x130   : > { %608 = dma.done.wait (!%p462_p2), %s340_s18, 256  }
 0x131   : > { %610 = vsyncadd (!%p462_p2), %s340_s18, 4294967040  ;;  %s19_s17 = sadd.s32 1, %s633_s17   ;;  %s866_s12 = smov %s617_s13 }
 0x132   : > { %p16_p5 = scmp.ge.s32.totalorder %s19_s17, 4   ;;  %s867_s13 = smov %s621_s14 }
 0x133   : > { %s868_s14 = smov %s718_s26  ;;  %s869_s15 = smov %s629_s16 }
 0x134   : > { %s870_s16 = smov %s872_s20  ;;  %18 = sbr.rel (!%p16_p5) target bundleno = 6 (0x6), region = 77 }
 0x13b   :  { %345 = vsyncpa [#allocation3], 1 }
 0x13c   :  { %347 = vsyncpa [#allocation3 + $0x1], 1 }
 0x13d   :  { %348 = vsyncpa [#allocation4], 1 }
 0x13e   :  { %350 = vsyncpa [#allocation4 + $0x1], 1 }

</bundles_post_ra>
